<compile_context>
chip_gen: v5e
topology: v5e:2x2
jax: 0.10.0
libtpu: 0.0.40
codegen_flags: <defaults>
</compile_context>

<pallas_src>
import jax
import jax.numpy as jnp
from jax import lax
from jax.experimental import pallas as pl
from jax.experimental.pallas import tpu as pltpu

N_NODES = 60   # num_nodes   (fixed by U_1)
N_STEPS = 5    # num_timesteps (fixed by b_e / V_e)
LANE = 128


def _timeblock_kernel(x_ref, u1_ref, u2_ref, be_ref, ve_ref, out_ref):
    """x_ref: (T, N, TB) VMEM; u1/u2: (N,1) VMEM; be: (T,T,1) VMEM;
    ve: (T,T) SMEM; out_ref: (T, T, TB) VMEM."""
    T, N = N_STEPS, N_NODES
    tb = x_ref.shape[-1]

    # Hoisted lane-broadcasts of the per-node weights (U_3 already folded into u1).
    u1 = jnp.broadcast_to(u1_ref[...], (N, tb))    # (N, TB)
    u2 = jnp.broadcast_to(u2_ref[...], (N, tb))    # (N, TB)
    be = be_ref[...]                               # (T, T, 1)

    # s[t, b] = U_3 * sum_n U_1[n] * X[b, n, t];  r[t, b] = sum_n U_2[n] * X[b, n, t]
    s_rows = []
    r_rows = []
    for t in range(T):
        xt = x_ref[t]                                              # (N, TB)
        s_rows.append(jnp.sum(xt * u1, axis=0, keepdims=True))     # (1, TB)
        r_rows.append(jnp.sum(xt * u2, axis=0, keepdims=True))     # (1, TB)
    r = jnp.concatenate(r_rows, axis=0)                            # (T, TB)

    # sig[k][j, b] = sigmoid(product[b, k, j] + b_e[k, j])
    sig = []
    for k in range(T):
        pre = s_rows[k] * r + be[k]        # (1,TB)*(T,TB) + (T,1) -> (T, TB)
        sig.append(jax.nn.sigmoid(pre))

    # E[i][j, b] = sum_k V_e[i, k] * sig[k][j, b]   (V_e scalars read from SMEM)
    e_rows = []
    for i in range(T):
        acc = ve_ref[i, 0] * sig[0]
        for k in range(1, T):
            acc = acc + ve_ref[i, k] * sig[k]
        e_rows.append(acc)                 # (T, TB)

    # softmax over i (torch dim 1)
    m = e_rows[0]
    for i in range(1, T):
        m = jnp.maximum(m, e_rows[i])
    ex = [jnp.exp(e_rows[i] - m) for i in range(T)]
    den = ex[0]
    for i in range(1, T):
        den = den + ex[i]
    inv = pl.reciprocal(den, approx=True)          # EUP slot, effectively free
    for i in range(T):
        out_ref[i] = ex[i] * inv                   # lane-dense (TB-wide) stores


def time_block(X, U_1, U_2, U_3, b_e, V_e, *, tb=512):
    """X: (B, N, T, 1) float32 (PyTorch layout). Returns (B, T, T) float32."""
    B, N, T, F = X.shape
    assert (N, T, F) == (N_NODES, N_STEPS, 1)
    f32 = jnp.float32

    # Single relayout pass: (B, N, T, 1) -> (T, N, B), batch on the lane axis.
    x_tnb = jnp.transpose(X[..., 0].astype(f32), (2, 1, 0))

    # Tile size: multiple of 128 lanes, clamped to the (lane-padded) batch.
    b_lanes = pl.cdiv(B, LANE) * LANE
    tb = max(LANE, (min(tb, b_lanes) // LANE) * LANE)
    b_pad = pl.cdiv(b_lanes, tb) * tb
    if b_pad != B:
        x_tnb = jnp.pad(x_tnb, ((0, 0), (0, 0), (0, b_pad - B)))

    u1 = (U_1.reshape(N, 1) * U_3.reshape(1, 1)).astype(f32)   # U_3 folded into U_1
    u2 = U_2.reshape(N, 1).astype(f32)
    be = b_e.reshape(T, T, 1).astype(f32)
    ve = V_e.reshape(T, T).astype(f32)

    out_ttb = pl.pallas_call(
        _timeblock_kernel,
        out_shape=jax.ShapeDtypeStruct((T, T, b_pad), f32),
        grid_spec=pltpu.PrefetchScalarGridSpec(
            num_scalar_prefetch=0,
            grid=(b_pad // tb,),
            in_specs=[
                pl.BlockSpec((T, N, tb), lambda b: (0, 0, b)),      # X tile
                pl.BlockSpec((N, 1), lambda b: (0, 0)),             # U_3 * U_1
                pl.BlockSpec((N, 1), lambda b: (0, 0)),             # U_2
                pl.BlockSpec((T, T, 1), lambda b: (0, 0, 0)),       # b_e
                pl.BlockSpec(memory_space=pltpu.MemorySpace.SMEM),  # V_e scalars
            ],
            out_specs=pl.BlockSpec((T, T, tb), lambda b: (0, 0, b)),
        ),
        compiler_params=pltpu.CompilerParams(
            dimension_semantics=("parallel",)),
    )(x_tnb, u1, u2, be, ve)

    # Cheap post-pass on the tiny output: (T, T, B_pad) -> (B, T, T).
    return jnp.transpose(out_ttb, (2, 0, 1))[:B]


def time_block_ref(X, U_1, U_2, U_3, b_e, V_e):
    """Plain-JAX mirror of the PyTorch forward, for verification."""
    hp = lax.Precision.HIGHEST
    lhs = jnp.matmul(
        jnp.matmul(jnp.transpose(X, (0, 2, 3, 1)), U_1, precision=hp),
        U_2, precision=hp)
    rhs = jnp.matmul(X, U_3, precision=hp)
    product = jnp.matmul(lhs, rhs, precision=hp)
    E = jnp.matmul(V_e, jax.nn.sigmoid(product + b_e), precision=hp)
    E = E - jnp.max(E, axis=1, keepdims=True)
    ex = jnp.exp(E)
    return ex / jnp.sum(ex, axis=1, keepdims=True)


if __name__ == "__main__":
    key = jax.random.PRNGKey(0)
    kx, k1, k2, k3, kb, kv = jax.random.split(key, 6)

    # Parameters (shapes exactly as in TimeBlock.__init__).
    U_1 = jax.random.normal(k1, (N_NODES,), dtype=jnp.float32)
    U_2 = jax.random.normal(k2, (1, N_NODES), dtype=jnp.float32)
    U_3 = jax.random.normal(k3, (1,), dtype=jnp.float32)
    b_e = jax.random.normal(kb, (1, N_STEPS, N_STEPS), dtype=jnp.float32)
    V_e = jax.random.normal(kv, (N_STEPS, N_STEPS), dtype=jnp.float32)

    # (batch, tile) configs: tiny batch (padded to one 128-lane tile),
    # non-multiple batch over several grid steps, and full 512-wide tiles.
    for B, tile in ((2, 512), (600, 128), (1024, 512)):
        kx, sub = jax.random.split(kx)
        X = jax.random.normal(sub, (B, N_NODES, N_STEPS, 1), dtype=jnp.float32)

        out = jax.block_until_ready(time_block(X, U_1, U_2, U_3, b_e, V_e, tb=tile))
        ref = time_block_ref(X, U_1, U_2, U_3, b_e, V_e)

        assert out.shape == (B, N_STEPS, N_STEPS)
        err = float(jnp.max(jnp.abs(out - ref)))
        assert jnp.allclose(out, ref, rtol=2e-3, atol=2e-3), (
            f"B={B} tb={tile}: max abs err = {err}")

    print("KERNEL_OK")
</pallas_src>

<mosaic_0001>
module attributes {stable_mosaic.version = 11 : i64} {
  func.func @_timeblock_kernel(%arg0: i32, %arg1: memref<5x60x128xf32, #tpu.memory_space<vmem>>, %arg2: memref<60x1xf32, #tpu.memory_space<vmem>>, %arg3: memref<60x1xf32, #tpu.memory_space<vmem>>, %arg4: memref<5x5x1xf32, #tpu.memory_space<vmem>>, %arg5: memref<5x5xf32, #tpu.memory_space<smem>>, %arg6: memref<5x5x128xf32, #tpu.memory_space<vmem>>) attributes {dimension_semantics = [#tpu.dimension_semantics<parallel>], iteration_bounds = array<i64: 1>, scalar_prefetch = 0 : i64, scratch_operands = 0 : i64, tpu.core_type = #tpu.core_type<tc>, window_params = [{transform_indices = @transform_0, window_bounds = array<i64: 5, 60, 128>}, {pipeline_mode = #tpu.pipeline_mode<synchronous>, transform_indices = @transform_1, window_bounds = array<i64: 60, 1>}, {pipeline_mode = #tpu.pipeline_mode<synchronous>, transform_indices = @transform_2, window_bounds = array<i64: 60, 1>}, {pipeline_mode = #tpu.pipeline_mode<synchronous>, transform_indices = @transform_3, window_bounds = array<i64: 5, 5, 1>}, {transform_indices = @transform_4, window_bounds = array<i64: 5, 5>}, {transform_indices = @transform_5, window_bounds = array<i64: 5, 5, 128>}]} {
    %c0 = arith.constant 0 : index
    %c0_0 = arith.constant 0 : index
    %0 = vector.load %arg2[%c0, %c0_0] : memref<60x1xf32, #tpu.memory_space<vmem>>, vector<60x1xf32>
    %1 = vector.shape_cast %0 : vector<60x1xf32> to vector<60x1xf32>
    %2 = vector.broadcast %1 : vector<60x1xf32> to vector<60x128xf32>
    %c0_1 = arith.constant 0 : index
    %c0_2 = arith.constant 0 : index
    %3 = vector.load %arg3[%c0_1, %c0_2] : memref<60x1xf32, #tpu.memory_space<vmem>>, vector<60x1xf32>
    %4 = vector.shape_cast %3 : vector<60x1xf32> to vector<60x1xf32>
    %5 = vector.broadcast %4 : vector<60x1xf32> to vector<60x128xf32>
    %c0_3 = arith.constant 0 : index
    %c0_4 = arith.constant 0 : index
    %c0_5 = arith.constant 0 : index
    %6 = vector.load %arg4[%c0_3, %c0_4, %c0_5] : memref<5x5x1xf32, #tpu.memory_space<vmem>>, vector<5x5x1xf32>
    %c0_6 = arith.constant 0 : index
    %c0_7 = arith.constant 0 : index
    %c0_8 = arith.constant 0 : index
    %7 = vector.load %arg1[%c0_6, %c0_7, %c0_8] : memref<5x60x128xf32, #tpu.memory_space<vmem>>, vector<1x60x128xf32>
    %8 = vector.shape_cast %7 : vector<1x60x128xf32> to vector<60x128xf32>
    %9 = arith.mulf %8, %2 : vector<60x128xf32>
    %cst = arith.constant dense<0.000000e+00> : vector<128xf32>
    %10 = vector.multi_reduction <add>, %9, %cst [0] : vector<60x128xf32> to vector<128xf32>
    %11 = vector.shape_cast %10 : vector<128xf32> to vector<1x128xf32>
    %12 = arith.mulf %8, %5 : vector<60x128xf32>
    %cst_9 = arith.constant dense<0.000000e+00> : vector<128xf32>
    %13 = vector.multi_reduction <add>, %12, %cst_9 [0] : vector<60x128xf32> to vector<128xf32>
    %14 = vector.shape_cast %13 : vector<128xf32> to vector<1x128xf32>
    %c1 = arith.constant 1 : index
    %c0_10 = arith.constant 0 : index
    %c0_11 = arith.constant 0 : index
    %15 = vector.load %arg1[%c1, %c0_10, %c0_11] : memref<5x60x128xf32, #tpu.memory_space<vmem>>, vector<1x60x128xf32>
    %16 = vector.shape_cast %15 : vector<1x60x128xf32> to vector<60x128xf32>
    %17 = arith.mulf %16, %2 : vector<60x128xf32>
    %cst_12 = arith.constant dense<0.000000e+00> : vector<128xf32>
    %18 = vector.multi_reduction <add>, %17, %cst_12 [0] : vector<60x128xf32> to vector<128xf32>
    %19 = vector.shape_cast %18 : vector<128xf32> to vector<1x128xf32>
    %20 = arith.mulf %16, %5 : vector<60x128xf32>
    %cst_13 = arith.constant dense<0.000000e+00> : vector<128xf32>
    %21 = vector.multi_reduction <add>, %20, %cst_13 [0] : vector<60x128xf32> to vector<128xf32>
    %22 = vector.shape_cast %21 : vector<128xf32> to vector<1x128xf32>
    %c2 = arith.constant 2 : index
    %c0_14 = arith.constant 0 : index
    %c0_15 = arith.constant 0 : index
    %23 = vector.load %arg1[%c2, %c0_14, %c0_15] : memref<5x60x128xf32, #tpu.memory_space<vmem>>, vector<1x60x128xf32>
    %24 = vector.shape_cast %23 : vector<1x60x128xf32> to vector<60x128xf32>
    %25 = arith.mulf %24, %2 : vector<60x128xf32>
    %cst_16 = arith.constant dense<0.000000e+00> : vector<128xf32>
    %26 = vector.multi_reduction <add>, %25, %cst_16 [0] : vector<60x128xf32> to vector<128xf32>
    %27 = vector.shape_cast %26 : vector<128xf32> to vector<1x128xf32>
    %28 = arith.mulf %24, %5 : vector<60x128xf32>
    %cst_17 = arith.constant dense<0.000000e+00> : vector<128xf32>
    %29 = vector.multi_reduction <add>, %28, %cst_17 [0] : vector<60x128xf32> to vector<128xf32>
    %30 = vector.shape_cast %29 : vector<128xf32> to vector<1x128xf32>
    %c3 = arith.constant 3 : index
    %c0_18 = arith.constant 0 : index
    %c0_19 = arith.constant 0 : index
    %31 = vector.load %arg1[%c3, %c0_18, %c0_19] : memref<5x60x128xf32, #tpu.memory_space<vmem>>, vector<1x60x128xf32>
    %32 = vector.shape_cast %31 : vector<1x60x128xf32> to vector<60x128xf32>
    %33 = arith.mulf %32, %2 : vector<60x128xf32>
    %cst_20 = arith.constant dense<0.000000e+00> : vector<128xf32>
    %34 = vector.multi_reduction <add>, %33, %cst_20 [0] : vector<60x128xf32> to vector<128xf32>
    %35 = vector.shape_cast %34 : vector<128xf32> to vector<1x128xf32>
    %36 = arith.mulf %32, %5 : vector<60x128xf32>
    %cst_21 = arith.constant dense<0.000000e+00> : vector<128xf32>
    %37 = vector.multi_reduction <add>, %36, %cst_21 [0] : vector<60x128xf32> to vector<128xf32>
    %38 = vector.shape_cast %37 : vector<128xf32> to vector<1x128xf32>
    %c4 = arith.constant 4 : index
    %c0_22 = arith.constant 0 : index
    %c0_23 = arith.constant 0 : index
    %39 = vector.load %arg1[%c4, %c0_22, %c0_23] : memref<5x60x128xf32, #tpu.memory_space<vmem>>, vector<1x60x128xf32>
    %40 = vector.shape_cast %39 : vector<1x60x128xf32> to vector<60x128xf32>
    %41 = arith.mulf %40, %2 : vector<60x128xf32>
    %cst_24 = arith.constant dense<0.000000e+00> : vector<128xf32>
    %42 = vector.multi_reduction <add>, %41, %cst_24 [0] : vector<60x128xf32> to vector<128xf32>
    %43 = vector.shape_cast %42 : vector<128xf32> to vector<1x128xf32>
    %44 = arith.mulf %40, %5 : vector<60x128xf32>
    %cst_25 = arith.constant dense<0.000000e+00> : vector<128xf32>
    %45 = vector.multi_reduction <add>, %44, %cst_25 [0] : vector<60x128xf32> to vector<128xf32>
    %46 = vector.shape_cast %45 : vector<128xf32> to vector<1x128xf32>
    %47 = tpu.concatenate %14, %22, %30, %38, %46 in 0 : vector<1x128xf32>, vector<1x128xf32>, vector<1x128xf32>, vector<1x128xf32>, vector<1x128xf32> -> vector<5x128xf32>
    %48 = vector.broadcast %11 : vector<1x128xf32> to vector<5x128xf32>
    %49 = arith.mulf %48, %47 : vector<5x128xf32>
    %50 = vector.extract_strided_slice %6 {offsets = [0, 0, 0], sizes = [1, 5, 1], strides = [1, 1, 1]} : vector<5x5x1xf32> to vector<1x5x1xf32>
    %51 = vector.shape_cast %50 : vector<1x5x1xf32> to vector<5x1xf32>
    %52 = vector.broadcast %51 : vector<5x1xf32> to vector<5x128xf32>
    %53 = arith.addf %49, %52 : vector<5x128xf32>
    %54 = arith.negf %53 : vector<5x128xf32>
    %55 = math.exp %54 : vector<5x128xf32>
    %cst_26 = arith.constant 1.000000e+00 : f32
    %56 = vector.broadcast %cst_26 : f32 to vector<5x128xf32>
    %57 = arith.addf %56, %55 : vector<5x128xf32>
    %58 = arith.divf %56, %57 : vector<5x128xf32>
    %59 = vector.broadcast %19 : vector<1x128xf32> to vector<5x128xf32>
    %60 = arith.mulf %59, %47 : vector<5x128xf32>
    %61 = vector.extract_strided_slice %6 {offsets = [1, 0, 0], sizes = [1, 5, 1], strides = [1, 1, 1]} : vector<5x5x1xf32> to vector<1x5x1xf32>
    %62 = vector.shape_cast %61 : vector<1x5x1xf32> to vector<5x1xf32>
    %63 = vector.broadcast %62 : vector<5x1xf32> to vector<5x128xf32>
    %64 = arith.addf %60, %63 : vector<5x128xf32>
    %65 = arith.negf %64 : vector<5x128xf32>
    %66 = math.exp %65 : vector<5x128xf32>
    %cst_27 = arith.constant 1.000000e+00 : f32
    %67 = vector.broadcast %cst_27 : f32 to vector<5x128xf32>
    %68 = arith.addf %67, %66 : vector<5x128xf32>
    %69 = arith.divf %67, %68 : vector<5x128xf32>
    %70 = vector.broadcast %27 : vector<1x128xf32> to vector<5x128xf32>
    %71 = arith.mulf %70, %47 : vector<5x128xf32>
    %72 = vector.extract_strided_slice %6 {offsets = [2, 0, 0], sizes = [1, 5, 1], strides = [1, 1, 1]} : vector<5x5x1xf32> to vector<1x5x1xf32>
    %73 = vector.shape_cast %72 : vector<1x5x1xf32> to vector<5x1xf32>
    %74 = vector.broadcast %73 : vector<5x1xf32> to vector<5x128xf32>
    %75 = arith.addf %71, %74 : vector<5x128xf32>
    %76 = arith.negf %75 : vector<5x128xf32>
    %77 = math.exp %76 : vector<5x128xf32>
    %cst_28 = arith.constant 1.000000e+00 : f32
    %78 = vector.broadcast %cst_28 : f32 to vector<5x128xf32>
    %79 = arith.addf %78, %77 : vector<5x128xf32>
    %80 = arith.divf %78, %79 : vector<5x128xf32>
    %81 = vector.broadcast %35 : vector<1x128xf32> to vector<5x128xf32>
    %82 = arith.mulf %81, %47 : vector<5x128xf32>
    %83 = vector.extract_strided_slice %6 {offsets = [3, 0, 0], sizes = [1, 5, 1], strides = [1, 1, 1]} : vector<5x5x1xf32> to vector<1x5x1xf32>
    %84 = vector.shape_cast %83 : vector<1x5x1xf32> to vector<5x1xf32>
    %85 = vector.broadcast %84 : vector<5x1xf32> to vector<5x128xf32>
    %86 = arith.addf %82, %85 : vector<5x128xf32>
    %87 = arith.negf %86 : vector<5x128xf32>
    %88 = math.exp %87 : vector<5x128xf32>
    %cst_29 = arith.constant 1.000000e+00 : f32
    %89 = vector.broadcast %cst_29 : f32 to vector<5x128xf32>
    %90 = arith.addf %89, %88 : vector<5x128xf32>
    %91 = arith.divf %89, %90 : vector<5x128xf32>
    %92 = vector.broadcast %43 : vector<1x128xf32> to vector<5x128xf32>
    %93 = arith.mulf %92, %47 : vector<5x128xf32>
    %94 = vector.extract_strided_slice %6 {offsets = [4, 0, 0], sizes = [1, 5, 1], strides = [1, 1, 1]} : vector<5x5x1xf32> to vector<1x5x1xf32>
    %95 = vector.shape_cast %94 : vector<1x5x1xf32> to vector<5x1xf32>
    %96 = vector.broadcast %95 : vector<5x1xf32> to vector<5x128xf32>
    %97 = arith.addf %93, %96 : vector<5x128xf32>
    %98 = arith.negf %97 : vector<5x128xf32>
    %99 = math.exp %98 : vector<5x128xf32>
    %cst_30 = arith.constant 1.000000e+00 : f32
    %100 = vector.broadcast %cst_30 : f32 to vector<5x128xf32>
    %101 = arith.addf %100, %99 : vector<5x128xf32>
    %102 = arith.divf %100, %101 : vector<5x128xf32>
    %c0_31 = arith.constant 0 : index
    %c0_32 = arith.constant 0 : index
    %103 = memref.load %arg5[%c0_31, %c0_32] : memref<5x5xf32, #tpu.memory_space<smem>>
    %104 = vector.broadcast %103 : f32 to vector<5x128xf32>
    %105 = arith.mulf %104, %58 : vector<5x128xf32>
    %c0_33 = arith.constant 0 : index
    %c1_34 = arith.constant 1 : index
    %106 = memref.load %arg5[%c0_33, %c1_34] : memref<5x5xf32, #tpu.memory_space<smem>>
    %107 = vector.broadcast %106 : f32 to vector<5x128xf32>
    %108 = arith.mulf %107, %69 : vector<5x128xf32>
    %109 = arith.addf %105, %108 : vector<5x128xf32>
    %c0_35 = arith.constant 0 : index
    %c2_36 = arith.constant 2 : index
    %110 = memref.load %arg5[%c0_35, %c2_36] : memref<5x5xf32, #tpu.memory_space<smem>>
    %111 = vector.broadcast %110 : f32 to vector<5x128xf32>
    %112 = arith.mulf %111, %80 : vector<5x128xf32>
    %113 = arith.addf %109, %112 : vector<5x128xf32>
    %c0_37 = arith.constant 0 : index
    %c3_38 = arith.constant 3 : index
    %114 = memref.load %arg5[%c0_37, %c3_38] : memref<5x5xf32, #tpu.memory_space<smem>>
    %115 = vector.broadcast %114 : f32 to vector<5x128xf32>
    %116 = arith.mulf %115, %91 : vector<5x128xf32>
    %117 = arith.addf %113, %116 : vector<5x128xf32>
    %c0_39 = arith.constant 0 : index
    %c4_40 = arith.constant 4 : index
    %118 = memref.load %arg5[%c0_39, %c4_40] : memref<5x5xf32, #tpu.memory_space<smem>>
    %119 = vector.broadcast %118 : f32 to vector<5x128xf32>
    %120 = arith.mulf %119, %102 : vector<5x128xf32>
    %121 = arith.addf %117, %120 : vector<5x128xf32>
    %c1_41 = arith.constant 1 : index
    %c0_42 = arith.constant 0 : index
    %122 = memref.load %arg5[%c1_41, %c0_42] : memref<5x5xf32, #tpu.memory_space<smem>>
    %123 = vector.broadcast %122 : f32 to vector<5x128xf32>
    %124 = arith.mulf %123, %58 : vector<5x128xf32>
    %c1_43 = arith.constant 1 : index
    %c1_44 = arith.constant 1 : index
    %125 = memref.load %arg5[%c1_43, %c1_44] : memref<5x5xf32, #tpu.memory_space<smem>>
    %126 = vector.broadcast %125 : f32 to vector<5x128xf32>
    %127 = arith.mulf %126, %69 : vector<5x128xf32>
    %128 = arith.addf %124, %127 : vector<5x128xf32>
    %c1_45 = arith.constant 1 : index
    %c2_46 = arith.constant 2 : index
    %129 = memref.load %arg5[%c1_45, %c2_46] : memref<5x5xf32, #tpu.memory_space<smem>>
    %130 = vector.broadcast %129 : f32 to vector<5x128xf32>
    %131 = arith.mulf %130, %80 : vector<5x128xf32>
    %132 = arith.addf %128, %131 : vector<5x128xf32>
    %c1_47 = arith.constant 1 : index
    %c3_48 = arith.constant 3 : index
    %133 = memref.load %arg5[%c1_47, %c3_48] : memref<5x5xf32, #tpu.memory_space<smem>>
    %134 = vector.broadcast %133 : f32 to vector<5x128xf32>
    %135 = arith.mulf %134, %91 : vector<5x128xf32>
    %136 = arith.addf %132, %135 : vector<5x128xf32>
    %c1_49 = arith.constant 1 : index
    %c4_50 = arith.constant 4 : index
    %137 = memref.load %arg5[%c1_49, %c4_50] : memref<5x5xf32, #tpu.memory_space<smem>>
    %138 = vector.broadcast %137 : f32 to vector<5x128xf32>
    %139 = arith.mulf %138, %102 : vector<5x128xf32>
    %140 = arith.addf %136, %139 : vector<5x128xf32>
    %c2_51 = arith.constant 2 : index
    %c0_52 = arith.constant 0 : index
    %141 = memref.load %arg5[%c2_51, %c0_52] : memref<5x5xf32, #tpu.memory_space<smem>>
    %142 = vector.broadcast %141 : f32 to vector<5x128xf32>
    %143 = arith.mulf %142, %58 : vector<5x128xf32>
    %c2_53 = arith.constant 2 : index
    %c1_54 = arith.constant 1 : index
    %144 = memref.load %arg5[%c2_53, %c1_54] : memref<5x5xf32, #tpu.memory_space<smem>>
    %145 = vector.broadcast %144 : f32 to vector<5x128xf32>
    %146 = arith.mulf %145, %69 : vector<5x128xf32>
    %147 = arith.addf %143, %146 : vector<5x128xf32>
    %c2_55 = arith.constant 2 : index
    %c2_56 = arith.constant 2 : index
    %148 = memref.load %arg5[%c2_55, %c2_56] : memref<5x5xf32, #tpu.memory_space<smem>>
    %149 = vector.broadcast %148 : f32 to vector<5x128xf32>
    %150 = arith.mulf %149, %80 : vector<5x128xf32>
    %151 = arith.addf %147, %150 : vector<5x128xf32>
    %c2_57 = arith.constant 2 : index
    %c3_58 = arith.constant 3 : index
    %152 = memref.load %arg5[%c2_57, %c3_58] : memref<5x5xf32, #tpu.memory_space<smem>>
    %153 = vector.broadcast %152 : f32 to vector<5x128xf32>
    %154 = arith.mulf %153, %91 : vector<5x128xf32>
    %155 = arith.addf %151, %154 : vector<5x128xf32>
    %c2_59 = arith.constant 2 : index
    %c4_60 = arith.constant 4 : index
    %156 = memref.load %arg5[%c2_59, %c4_60] : memref<5x5xf32, #tpu.memory_space<smem>>
    %157 = vector.broadcast %156 : f32 to vector<5x128xf32>
    %158 = arith.mulf %157, %102 : vector<5x128xf32>
    %159 = arith.addf %155, %158 : vector<5x128xf32>
    %c3_61 = arith.constant 3 : index
    %c0_62 = arith.constant 0 : index
    %160 = memref.load %arg5[%c3_61, %c0_62] : memref<5x5xf32, #tpu.memory_space<smem>>
    %161 = vector.broadcast %160 : f32 to vector<5x128xf32>
    %162 = arith.mulf %161, %58 : vector<5x128xf32>
    %c3_63 = arith.constant 3 : index
    %c1_64 = arith.constant 1 : index
    %163 = memref.load %arg5[%c3_63, %c1_64] : memref<5x5xf32, #tpu.memory_space<smem>>
    %164 = vector.broadcast %163 : f32 to vector<5x128xf32>
    %165 = arith.mulf %164, %69 : vector<5x128xf32>
    %166 = arith.addf %162, %165 : vector<5x128xf32>
    %c3_65 = arith.constant 3 : index
    %c2_66 = arith.constant 2 : index
    %167 = memref.load %arg5[%c3_65, %c2_66] : memref<5x5xf32, #tpu.memory_space<smem>>
    %168 = vector.broadcast %167 : f32 to vector<5x128xf32>
    %169 = arith.mulf %168, %80 : vector<5x128xf32>
    %170 = arith.addf %166, %169 : vector<5x128xf32>
    %c3_67 = arith.constant 3 : index
    %c3_68 = arith.constant 3 : index
    %171 = memref.load %arg5[%c3_67, %c3_68] : memref<5x5xf32, #tpu.memory_space<smem>>
    %172 = vector.broadcast %171 : f32 to vector<5x128xf32>
    %173 = arith.mulf %172, %91 : vector<5x128xf32>
    %174 = arith.addf %170, %173 : vector<5x128xf32>
    %c3_69 = arith.constant 3 : index
    %c4_70 = arith.constant 4 : index
    %175 = memref.load %arg5[%c3_69, %c4_70] : memref<5x5xf32, #tpu.memory_space<smem>>
    %176 = vector.broadcast %175 : f32 to vector<5x128xf32>
    %177 = arith.mulf %176, %102 : vector<5x128xf32>
    %178 = arith.addf %174, %177 : vector<5x128xf32>
    %c4_71 = arith.constant 4 : index
    %c0_72 = arith.constant 0 : index
    %179 = memref.load %arg5[%c4_71, %c0_72] : memref<5x5xf32, #tpu.memory_space<smem>>
    %180 = vector.broadcast %179 : f32 to vector<5x128xf32>
    %181 = arith.mulf %180, %58 : vector<5x128xf32>
    %c4_73 = arith.constant 4 : index
    %c1_74 = arith.constant 1 : index
    %182 = memref.load %arg5[%c4_73, %c1_74] : memref<5x5xf32, #tpu.memory_space<smem>>
    %183 = vector.broadcast %182 : f32 to vector<5x128xf32>
    %184 = arith.mulf %183, %69 : vector<5x128xf32>
    %185 = arith.addf %181, %184 : vector<5x128xf32>
    %c4_75 = arith.constant 4 : index
    %c2_76 = arith.constant 2 : index
    %186 = memref.load %arg5[%c4_75, %c2_76] : memref<5x5xf32, #tpu.memory_space<smem>>
    %187 = vector.broadcast %186 : f32 to vector<5x128xf32>
    %188 = arith.mulf %187, %80 : vector<5x128xf32>
    %189 = arith.addf %185, %188 : vector<5x128xf32>
    %c4_77 = arith.constant 4 : index
    %c3_78 = arith.constant 3 : index
    %190 = memref.load %arg5[%c4_77, %c3_78] : memref<5x5xf32, #tpu.memory_space<smem>>
    %191 = vector.broadcast %190 : f32 to vector<5x128xf32>
    %192 = arith.mulf %191, %91 : vector<5x128xf32>
    %193 = arith.addf %189, %192 : vector<5x128xf32>
    %c4_79 = arith.constant 4 : index
    %c4_80 = arith.constant 4 : index
    %194 = memref.load %arg5[%c4_79, %c4_80] : memref<5x5xf32, #tpu.memory_space<smem>>
    %195 = vector.broadcast %194 : f32 to vector<5x128xf32>
    %196 = arith.mulf %195, %102 : vector<5x128xf32>
    %197 = arith.addf %193, %196 : vector<5x128xf32>
    %198 = arith.maximumf %121, %140 : vector<5x128xf32>
    %199 = arith.maximumf %198, %159 : vector<5x128xf32>
    %200 = arith.maximumf %199, %178 : vector<5x128xf32>
    %201 = arith.maximumf %200, %197 : vector<5x128xf32>
    %202 = arith.subf %121, %201 : vector<5x128xf32>
    %203 = math.exp %202 : vector<5x128xf32>
    %204 = arith.subf %140, %201 : vector<5x128xf32>
    %205 = math.exp %204 : vector<5x128xf32>
    %206 = arith.subf %159, %201 : vector<5x128xf32>
    %207 = math.exp %206 : vector<5x128xf32>
    %208 = arith.subf %178, %201 : vector<5x128xf32>
    %209 = math.exp %208 : vector<5x128xf32>
    %210 = arith.subf %197, %201 : vector<5x128xf32>
    %211 = math.exp %210 : vector<5x128xf32>
    %212 = arith.addf %203, %205 : vector<5x128xf32>
    %213 = arith.addf %212, %207 : vector<5x128xf32>
    %214 = arith.addf %213, %209 : vector<5x128xf32>
    %215 = arith.addf %214, %211 : vector<5x128xf32>
    %216 = tpu.reciprocal %215 {approx = true} : vector<5x128xf32> -> vector<5x128xf32>
    %217 = arith.mulf %203, %216 : vector<5x128xf32>
    %c0_81 = arith.constant 0 : index
    %c0_82 = arith.constant 0 : index
    %c0_83 = arith.constant 0 : index
    %218 = vector.load %arg6[%c0_81, %c0_82, %c0_83] : memref<5x5x128xf32, #tpu.memory_space<vmem>>, vector<1x5x128xf32>
    %219 = vector.shape_cast %218 : vector<1x5x128xf32> to vector<5x128xf32>
    %220 = vector.shape_cast %217 : vector<5x128xf32> to vector<1x5x128xf32>
    tpu.vector_store %arg6[%c0_81, %c0_82, %c0_83], %220 {strides = array<i32>} : memref<5x5x128xf32, #tpu.memory_space<vmem>>, vector<1x5x128xf32>,
    %221 = arith.mulf %205, %216 : vector<5x128xf32>
    %c1_84 = arith.constant 1 : index
    %c0_85 = arith.constant 0 : index
    %c0_86 = arith.constant 0 : index
    %222 = vector.load %arg6[%c1_84, %c0_85, %c0_86] : memref<5x5x128xf32, #tpu.memory_space<vmem>>, vector<1x5x128xf32>
    %223 = vector.shape_cast %222 : vector<1x5x128xf32> to vector<5x128xf32>
    %224 = vector.shape_cast %221 : vector<5x128xf32> to vector<1x5x128xf32>
    tpu.vector_store %arg6[%c1_84, %c0_85, %c0_86], %224 {strides = array<i32>} : memref<5x5x128xf32, #tpu.memory_space<vmem>>, vector<1x5x128xf32>,
    %225 = arith.mulf %207, %216 : vector<5x128xf32>
    %c2_87 = arith.constant 2 : index
    %c0_88 = arith.constant 0 : index
    %c0_89 = arith.constant 0 : index
    %226 = vector.load %arg6[%c2_87, %c0_88, %c0_89] : memref<5x5x128xf32, #tpu.memory_space<vmem>>, vector<1x5x128xf32>
    %227 = vector.shape_cast %226 : vector<1x5x128xf32> to vector<5x128xf32>
    %228 = vector.shape_cast %225 : vector<5x128xf32> to vector<1x5x128xf32>
    tpu.vector_store %arg6[%c2_87, %c0_88, %c0_89], %228 {strides = array<i32>} : memref<5x5x128xf32, #tpu.memory_space<vmem>>, vector<1x5x128xf32>,
    %229 = arith.mulf %209, %216 : vector<5x128xf32>
    %c3_90 = arith.constant 3 : index
    %c0_91 = arith.constant 0 : index
    %c0_92 = arith.constant 0 : index
    %230 = vector.load %arg6[%c3_90, %c0_91, %c0_92] : memref<5x5x128xf32, #tpu.memory_space<vmem>>, vector<1x5x128xf32>
    %231 = vector.shape_cast %230 : vector<1x5x128xf32> to vector<5x128xf32>
    %232 = vector.shape_cast %229 : vector<5x128xf32> to vector<1x5x128xf32>
    tpu.vector_store %arg6[%c3_90, %c0_91, %c0_92], %232 {strides = array<i32>} : memref<5x5x128xf32, #tpu.memory_space<vmem>>, vector<1x5x128xf32>,
    %233 = arith.mulf %211, %216 : vector<5x128xf32>
    %c4_93 = arith.constant 4 : index
    %c0_94 = arith.constant 0 : index
    %c0_95 = arith.constant 0 : index
    %234 = vector.load %arg6[%c4_93, %c0_94, %c0_95] : memref<5x5x128xf32, #tpu.memory_space<vmem>>, vector<1x5x128xf32>
    %235 = vector.shape_cast %234 : vector<1x5x128xf32> to vector<5x128xf32>
    %236 = vector.shape_cast %233 : vector<5x128xf32> to vector<1x5x128xf32>
    tpu.vector_store %arg6[%c4_93, %c0_94, %c0_95], %236 {strides = array<i32>} : memref<5x5x128xf32, #tpu.memory_space<vmem>>, vector<1x5x128xf32>,
    return
  }
  func.func @transform_0(%arg0: i32) -> (i32, i32, i32) {
    %c0_i32 = arith.constant 0 : i32
    %c0_i32_0 = arith.constant 0 : i32
    %c0_i32_1 = arith.constant 0 : i32
    return %c0_i32, %c0_i32_0, %arg0 : i32, i32, i32
  }
  func.func @transform_1(%arg0: i32) -> (i32, i32) {
    %c0_i32 = arith.constant 0 : i32
    %c0_i32_0 = arith.constant 0 : i32
    %c0_i32_1 = arith.constant 0 : i32
    return %c0_i32, %c0_i32_0 : i32, i32
  }
  func.func @transform_2(%arg0: i32) -> (i32, i32) {
    %c0_i32 = arith.constant 0 : i32
    %c0_i32_0 = arith.constant 0 : i32
    %c0_i32_1 = arith.constant 0 : i32
    return %c0_i32, %c0_i32_0 : i32, i32
  }
  func.func @transform_3(%arg0: i32) -> (i32, i32, i32) {
    %c0_i32 = arith.constant 0 : i32
    %c0_i32_0 = arith.constant 0 : i32
    %c0_i32_1 = arith.constant 0 : i32
    %c0_i32_2 = arith.constant 0 : i32
    return %c0_i32, %c0_i32_0, %c0_i32_1 : i32, i32, i32
  }
  func.func @transform_4(%arg0: i32) -> (i32, i32) {
    %c0_i32 = arith.constant 0 : i32
    %c0_i32_0 = arith.constant 0 : i32
    %c0_i32_1 = arith.constant 0 : i32
    return %c0_i32, %c0_i32_0 : i32, i32
  }
  func.func @transform_5(%arg0: i32) -> (i32, i32, i32) {
    %c0_i32 = arith.constant 0 : i32
    %c0_i32_0 = arith.constant 0 : i32
    %c0_i32_1 = arith.constant 0 : i32
    return %c0_i32, %c0_i32_0, %arg0 : i32, i32, i32
  }
}

</mosaic_0001>

<bundles_post_ra>
// kernel: tpu_custom_call.1
= control target key start
LH: loop header
LB: loop body
LE: loop exit
PB: predicated region body
PF: predicated region fallthrough
CT: control target
= control target key end

     0   :  { %10 = vsyncpa [#allocation3], 0  ;;  %s1298_s0 = inlined_call_operand.hbm [shape: f32[5,60,128], index: 0, kind: input, shape index: {}]   ;;  %s1299_s1 = inlined_call_operand.vmem [shape: f32[60,1], index: 1, kind: input, shape index: {}]   ;;  %s1300_s2 = inlined_call_operand.vmem [shape: f32[60,1], index: 2, kind: input, shape index: {}]   ;;  %s1301_s3 = inlined_call_operand.vmem [shape: f32[5,5,1], index: 3, kind: input, shape index: {}]   ;;  %s1302_s4 = inlined_call_operand.vmem [shape: f32[5,5], index: 4, kind: input, shape index: {}]   ;;  %s1303_s5 = inlined_call_operand.hbm [shape: f32[5,5,128], index: 5, kind: output, shape index: {}]  }
   0x1   :  { %11 = vsyncpa [#allocation5], 0 }
   0x2   :  { %12 = vsyncpa [#allocation4], 0  ;;  %s17_s20 = sshll.u32 %s1298_s0, 4  ;;  %s842_s21 = smov [#allocation2]   ;;  %s18_s20 = int_to_ptr.hbm [resolvable:$true] %s17_s20 }
   0x3   :  { %s19_s22 = sshll.u32 %s842_s21, 4  ;;  %s37_s25 = sshll.u32 %s1302_s4, 4  ;;  %s20_s22 = int_to_ptr.vmem [resolvable:$true] %s19_s22  ;;  %s38_s25 = int_to_ptr.vmem [resolvable:$true] %s37_s25 }
   0x4   :  { %s843_s26 = smov 128   ;;  %s844_s27 = smov 8  }
   0x5   :  { %25 = dma.hbm_to_vmem [thread:$0]  %s18_s20, 5120, %s20_s22, [#allocation3], %s843_s26, %s843_s26, %s844_s27  }
   0x6   :  { %s845_s28 = smov [#allocation6]  }
   0x7   :  { %40 = dma.vmem_to_smem %s38_s25, 128, %s845_s28, [#allocation5]  }
   0x8   :  { %836 = dma.done.wait [#allocation3], 5120  }
   0x9   :  { %837 = vsyncadd [#allocation3], 4294962176 }
   0xa   :  { %838 = dma.done.wait [#allocation5], 128  }
   0xb   :  { %839 = vsyncadd [#allocation5], 4294967168 }
   0xc   :  { %49 = sfence }
   0xd   :  { %v100_v0 = vld [vmem:[%s1300_s2 + $0x10] sm:$0xff]  ;;  %v98_v1 = vld [vmem:[%s1300_s2] sm:$0xff]  ;;  %v51_v2 = vld [vmem:[%s1299_s1 + $0x8] sm:$0xff]  ;;  %v846_v3 = vmov 0   ;;  %vm173_vm0 = vcmask 1043456   ;;  %vm416_vm1 = vcmask 1040384  }
   0xe   :  { %743 = vset.pattern.permute.xlu2 %v846_v3  ;;  %742 = vset.pattern.permute.xlu1 %v846_v3  ;;  %v50_v4 = vld [vmem:[%s1299_s1] sm:$0xff]  ;;  %v99_v5 = vld [vmem:[%s1300_s2 + $0x8] sm:$0xff]  ;;  %v101_v6 = vld [vmem:[%s1300_s2 + $0x18] sm:$0xff]  ;;  %vm418_vm2 = vcmask 1041408   ;;  %vm420_vm3 = vcmask 1042432   ;;  %s1096_s18 = sld [smem:[#allocation6 + $0x80]] }
   0xf   :  { %741 = vset.pattern.permute.xlu0 %v846_v3  ;;  %118 = vperm.xlu1 %742, %v100_v0   ;;  %v102_v7 = vld [vmem:[%s1300_s2 + $0x20] sm:$0xff]  ;;  %v52_v8 = vld [vmem:[%s1299_s1 + $0x10] sm:$0xff]  ;;  %v53_v9 = vld [vmem:[%s1299_s1 + $0x18] sm:$0xff]  ;;  %s1098_s19 = sld [smem:[#allocation6 + $0x81]]  ;;  %s847_s15 = smov [#allocation7]  }
  0x10   :  { %108 = vperm.xlu0 %741, %v98_v1   ;;  %65 = vperm.xlu2 %743, %v51_v2   ;;  %v54_v10 = vld [vmem:[%s1299_s1 + $0x20] sm:$0xff]  ;;  %v103_v11 = vld [vmem:[%s1300_s2 + $0x28] sm:$0xff]  ;;  %v104_v12 = vld [vmem:[%s1300_s2 + $0x30] sm:$0xff]  ;;  %s1100_s20 = sld [smem:[#allocation6 + $0x100]]  ;;  %s690_s16 = sshll.u32 %s847_s15, 4  ;;  %s691_s16 = int_to_ptr.vmem [resolvable:$true] %s690_s16 }
  0x11   :  { %v55_v13 = vld [vmem:[%s1299_s1 + $0x28] sm:$0xff]  ;;  %v105_v14 = vld [vmem:[%s1300_s2 + $0x38] sm:$0xf]  ;;  %v56_v15 = vld [vmem:[%s1299_s1 + $0x30] sm:$0xff]  ;;  %s1102_s21 = sld [smem:[#allocation6 + $0x101]] }
  0x12   :  { %v146_v16 = vld [vmem:[%s1301_s3] sm:$0x1f]  ;;  %v57_v17 = vld [vmem:[%s1299_s1 + $0x38] sm:$0xf]  ;;  %v147_v18 = vld [vmem:[%s1301_s3 + $0x8] sm:$0x1f] }
  0x13   :  { %v149_v19 = vld [vmem:[%s1301_s3 + $0x18] sm:$0x1f]  ;;  %v148_v20 = vld [vmem:[%s1301_s3 + $0x10] sm:$0x1f]  ;;  %v150_v21 = vld [vmem:[%s1301_s3 + $0x20] sm:$0x1f] }
  0x14   :  { %v152_v25 = vld [vmem:[#allocation2 + $0x8] sm:$0xff]  ;;  %v154_v32 = vld [vmem:[#allocation2 + $0x18] sm:$0xff]  ;;  %v956_v40 = vld [vmem:[#allocation2 + $0x10] sm:$0xff]  ;;  %s1092_s1 = sld [smem:[#allocation6]] }
  0x15   :  { %v206_v27 = vld [vmem:[#allocation2 + $0x48] sm:$0xff]  ;;  %v208_v33 = vld [vmem:[#allocation2 + $0x58] sm:$0xff]  ;;  %v966_v45 = vld [vmem:[#allocation2 + $0x50] sm:$0xff]  ;;  %s1094_s3 = sld [smem:[#allocation6 + $0x1]] }
  0x16   :  { %v259_v28 = vld [vmem:[#allocation2 + $0x88] sm:$0xff]  ;;  %v261_v35 = vld [vmem:[#allocation2 + $0x98] sm:$0xff]  ;;  %v968_v46 = vld [vmem:[#allocation2 + $0x90] sm:$0xff]  ;;  %s1104_s22 = sld [smem:[#allocation6 + $0x180]] }
  0x17   :  { %60 = vperm.xlu1 %742, %v50_v4   ;;  %v312_v29 = vld [vmem:[#allocation2 + $0xc8] sm:$0xff]  ;;  %v314_v36 = vld [vmem:[#allocation2 + $0xd8] sm:$0xff]  ;;  %v970_v47 = vld [vmem:[#allocation2 + $0xd0] sm:$0xff]  ;;  %s1106_s23 = sld [smem:[#allocation6 + $0x181]] }
  0x18   :  { %113 = vperm.xlu0 %741, %v99_v5   ;;  %123 = vperm.xlu2 %743, %v101_v6   ;;  %v365_v31 = vld [vmem:[#allocation2 + $0x108] sm:$0xff]  ;;  %v367_v37 = vld [vmem:[#allocation2 + $0x118] sm:$0xff]  ;;  %v980_v52 = vld [vmem:[#allocation2 + $0x110] sm:$0xff]  ;;  %s1110_s24 = sld [smem:[#allocation6 + $0x200]] }
  0x19   :  { %v151_v53 = vld [vmem:[#allocation2] sm:$0xff]  ;;  %s1112_s25 = sld [smem:[#allocation6 + $0x201]] }
  0x1a   :  { %v205_v54 = vld [vmem:[#allocation2 + $0x40] sm:$0xff]  ;;  %s1115_s28 = sld [smem:[#allocation6 + $0x2]] }
  0x1b   :  { %v258_v63 = vld [vmem:[#allocation2 + $0x80] sm:$0xff]  ;;  %s1119_s0 = sld [smem:[#allocation6 + $0x82]] }
  0x1c   :  { %v311_v0 = vld [vmem:[#allocation2 + $0xc0] sm:$0xff]  ;;  %s1123_s29 = sld [smem:[#allocation6 + $0x102]] }
  0x1d   :  { %v364_v1 = vld [vmem:[#allocation2 + $0x100] sm:$0xff]  ;;  %s1126_s30 = sld [smem:[#allocation6 + $0x182]] }
  0x1e   :  { %s1129_s4 = sld [smem:[#allocation6 + $0x202]] }
  0x1f   :  { %128 = vperm.xlu1 %742, %v102_v7   ;;  %v157_v7 = vld [vmem:[#allocation2 + $0x30] sm:$0xff]  ;;  %s1138_s6 = sld [smem:[#allocation6 + $0x3]] }
  0x20   :  { %70 = vperm.xlu0 %741, %v52_v8   ;;  %75 = vperm.xlu2 %743, %v53_v9   ;;  %s1148_s7 = sld [smem:[#allocation6 + $0x83]] }
  0x21   :  { %s1160_s8 = sld [smem:[#allocation6 + $0x103]] }
  0x22   :  { %s1166_s9 = sld [smem:[#allocation6 + $0x4]] }
  0x23   :  { %s1199_s10 = sld [smem:[#allocation6 + $0x84]] }
  0x24   :  { %s1225_s11 = sld [smem:[#allocation6 + $0x183]] }
  0x25   :  { %s1230_s12 = sld [smem:[#allocation6 + $0x104]] }
  0x26   :  { %s1248_s2 = sld [smem:[#allocation6 + $0x203]] }
  0x27   :  { %80 = vperm.xlu1 %742, %v54_v10   ;;  %s1261_s13 = sld [smem:[#allocation6 + $0x184]] }
  0x28   :  { %133 = vperm.xlu0 %741, %v103_v11   ;;  %138 = vperm.xlu2 %743, %v104_v12   ;;  %s1273_s14 = sld [smem:[#allocation6 + $0x204]] }
  0x2f   :  { %85 = vperm.xlu1 %742, %v55_v13  }
  0x30   :  { %143 = vperm.xlu0 %741, %v105_v14   ;;  %90 = vperm.xlu2 %743, %v56_v15  }
  0x37   :  { %426 = vperm.xlu1 %742, %v146_v16   ;;  %v211_v16 = vld [vmem:[#allocation2 + $0x70] sm:$0xff] }
  0x38   :  { %95 = vperm.xlu0 %741, %v57_v17   ;;  %452 = vperm.xlu2 %743, %v147_v18   ;;  %v264_v17 = vld [vmem:[#allocation2 + $0xb0] sm:$0xff] }
  0x39   :  { %v997_v18 = vld [vmem:[#allocation2 + $0xf0] sm:$0xff] }
  0x3f   :  { %504 = vperm.xlu1 %742, %v149_v19  }
  0x40   :  { %478 = vperm.xlu0 %741, %v148_v20   ;;  %530 = vperm.xlu2 %743, %v150_v21   ;;  %v999_v20 = vld [vmem:[#allocation2 + $0x130] sm:$0xff] }
  0x6a   :  { %v66_v22 = vpop.permute.xlu2 %65 }
  0x6b   :  { %v952_v38 = vmul.f32 %v152_v25, %v66_v22  ;;  %v954_v39 = vmul.f32 %v206_v27, %v66_v22  ;;  %v958_v41 = vmul.f32 %v259_v28, %v66_v22  ;;  %v960_v42 = vmul.f32 %v312_v29, %v66_v22 }
  0x6c   :  { %v962_v43 = vmul.f32 %v365_v31, %v66_v22 }
  0x72   :  { %v124_v23 = vpop.permute.xlu2 %123 }
  0x73   :  { %v964_v44 = vmul.f32 %v154_v32, %v124_v23  ;;  %v972_v48 = vmul.f32 %v208_v33, %v124_v23  ;;  %v974_v49 = vmul.f32 %v261_v35, %v124_v23  ;;  %v976_v50 = vmul.f32 %v314_v36, %v124_v23 }
  0x74   :  { %v978_v51 = vmul.f32 %v367_v37, %v124_v23 }
  0x7a   :  { %v76_v24 = vpop.permute.xlu2 %75 }
  0x7b   :  { %v982_v55 = vmul.f32 %v154_v32, %v76_v24  ;;  %v984_v56 = vmul.f32 %v208_v33, %v76_v24  ;;  %v986_v57 = vmul.f32 %v261_v35, %v76_v24  ;;  %v988_v58 = vmul.f32 %v314_v36, %v76_v24 }
  0x7c   :  { %v990_v59 = vmul.f32 %v367_v37, %v76_v24 }
  0x81   :  { %v119_v26 = vpop.permute.xlu1 %118 }
  0x82   :  { %v109_v30 = vpop.permute.xlu0 %108  ;;  %v950_v34 = vpop.permute.xlu2 %138  ;;  %v184_v60 = vmul.f32 %v956_v40, %v119_v26  ;;  %v237_v61 = vmul.f32 %v966_v45, %v119_v26  ;;  %v290_v62 = vmul.f32 %v968_v46, %v119_v26  ;;  %v343_v3 = vmul.f32 %v970_v47, %v119_v26 }
  0x83   :  { %v396_v4 = vmul.f32 %v980_v52, %v119_v26  ;;  %v182_v5 = vmul.f32 %v151_v53, %v109_v30  ;;  %v235_v6 = vmul.f32 %v205_v54, %v109_v30  ;;  %v288_v13 = vmul.f32 %v258_v63, %v109_v30 }
  0x84   :  { %v341_v14 = vmul.f32 %v311_v0, %v109_v30  ;;  %v394_v15 = vmul.f32 %v364_v1, %v109_v30  ;;  %v1002_v21 = vmul.f32 %v157_v7, %v950_v34  ;;  %v1007_v30 = vmul.f32 %v211_v16, %v950_v34 }
  0x85   :  { %v1010_v32 = vmul.f32 %v264_v17, %v950_v34  ;;  %v1018_v35 = vmul.f32 %v999_v20, %v950_v34 }
  0x89   :  { %v61_v2 = vpop.permute.xlu1 %60 }
  0x8a   :  { %v114_v8 = vpop.permute.xlu0 %113  ;;  %v1004_v24 = vpop.permute.xlu2 %90  ;;  %v266_v33 = vmul.f32 %v258_v63, %v61_v2  ;;  %v209_v63 = vld [vmem:[#allocation2 + $0x60] sm:$0xff] }
  0x8b   :  { %v183_v9 = vmul.f32 %v152_v25, %v114_v8  ;;  %v236_v10 = vmul.f32 %v206_v27, %v114_v8  ;;  %v289_v11 = vmul.f32 %v259_v28, %v114_v8  ;;  %v342_v12 = vmul.f32 %v312_v29, %v114_v8 }
  0x8c   :  { %v395_v19 = vmul.f32 %v365_v31, %v114_v8  ;;  %v159_v25 = vmul.f32 %v151_v53, %v61_v2  ;;  %v213_v29 = vmul.f32 %v205_v54, %v61_v2  ;;  %v1014_v31 = vmul.f32 %v997_v18, %v950_v34 }
  0x8d   :  { %v190_v22 = vadd.f32 %v183_v9, %v182_v5  ;;  %v243_v23 = vadd.f32 %v236_v10, %v235_v6  ;;  %v296_v26 = vadd.f32 %v289_v11, %v288_v13  ;;  %v349_v27 = vadd.f32 %v342_v12, %v341_v14  ;;  %v155_v9 = vld [vmem:[#allocation2 + $0x20] sm:$0xff] }
  0x8e   :  { %v402_v28 = vadd.f32 %v395_v19, %v394_v15  ;;  %v1021_v37 = vmul.f32 %v157_v7, %v1004_v24  ;;  %v319_v53 = vmul.f32 %v311_v0, %v61_v2  ;;  %v1024_v5 = vmul.f32 %v211_v16, %v1004_v24  ;;  %v262_v13 = vld [vmem:[#allocation2 + $0xa0] sm:$0xff] }
  0x8f   :  { %v191_v36 = vadd.f32 %v190_v22, %v184_v60  ;;  %v244_v54 = vadd.f32 %v243_v23, %v237_v61  ;;  %v1027_v6 = vmul.f32 %v264_v17, %v1004_v24  ;;  %v167_v8 = vadd.f32 %v952_v38, %v159_v25  ;;  %v315_v16 = vld [vmem:[#allocation2 + $0xe0] sm:$0xff] }
  0x90   :  { %v297_v11 = vadd.f32 %v296_v26, %v290_v62  ;;  %v350_v34 = vadd.f32 %v349_v27, %v343_v3  ;;  %v403_v12 = vadd.f32 %v402_v28, %v396_v4  ;;  %v221_v60 = vadd.f32 %v954_v39, %v213_v29  ;;  %v368_v17 = vld [vmem:[#allocation2 + $0x120] sm:$0xff]  ;;  %v156_v26 = vld [vmem:[#allocation2 + $0x28] sm:$0xff] }
  0x91   :  { %v129_v10 = vpop.permute.xlu1 %128  ;;  %v274_v61 = vadd.f32 %v958_v41, %v266_v33  ;;  %v372_v0 = vmul.f32 %v364_v1, %v61_v2  ;;  %v192_v19 = vadd.f32 %v191_v36, %v964_v44  ;;  %v245_v1 = vadd.f32 %v244_v54, %v972_v48  ;;  %v210_v29 = vld [vmem:[#allocation2 + $0x68] sm:$0xff] }
  0x92   :  { %v71_v7 = vpop.permute.xlu0 %70  ;;  %v186_v62 = vmul.f32 %v155_v9, %v129_v10  ;;  %v239_v3 = vmul.f32 %v209_v63, %v129_v10  ;;  %v292_v23 = vmul.f32 %v262_v13, %v129_v10  ;;  %v398_v2 = vmul.f32 %v368_v17, %v129_v10  ;;  %v263_v33 = vld [vmem:[#allocation2 + $0xa8] sm:$0xff] }
  0x93   :  { %v161_v14 = vmul.f32 %v956_v40, %v71_v7  ;;  %v215_v15 = vmul.f32 %v966_v45, %v71_v7  ;;  %v268_v38 = vmul.f32 %v968_v46, %v71_v7  ;;  %v321_v39 = vmul.f32 %v970_v47, %v71_v7  ;;  %v316_v36 = vld [vmem:[#allocation2 + $0xe8] sm:$0xff] }
  0x94   :  { %v374_v22 = vmul.f32 %v980_v52, %v71_v7  ;;  %v345_v40 = vmul.f32 %v315_v16, %v129_v10  ;;  %v327_v45 = vadd.f32 %v960_v42, %v319_v53  ;;  %v380_v25 = vadd.f32 %v962_v43, %v372_v0  ;;  %v1044_v10 = vld [vmem:[#allocation2 + $0x128] sm:$0xff] }
  0x95   :  { %v168_v4 = vadd.f32 %v167_v8, %v161_v14  ;;  %v222_v41 = vadd.f32 %v221_v60, %v215_v15  ;;  %v298_v46 = vadd.f32 %v297_v11, %v974_v49  ;;  %v351_v44 = vadd.f32 %v350_v34, %v976_v50 }
  0x96   :  { %v275_v27 = vadd.f32 %v274_v61, %v268_v38  ;;  %v404_v47 = vadd.f32 %v403_v12, %v978_v51  ;;  %v193_v28 = vadd.f32 %v192_v19, %v186_v62  ;;  %v246_v52 = vadd.f32 %v245_v1, %v239_v3 }
  0x97   :  { %v328_v48 = vadd.f32 %v327_v45, %v321_v39  ;;  %v381_v54 = vadd.f32 %v380_v25, %v374_v22  ;;  %v299_v8 = vadd.f32 %v298_v46, %v292_v23  ;;  %v169_v42 = vadd.f32 %v168_v4, %v982_v55 }
  0x98   :  { %v352_v49 = vadd.f32 %v351_v44, %v345_v40  ;;  %v405_v53 = vadd.f32 %v404_v47, %v398_v2  ;;  %v223_v11 = vadd.f32 %v222_v41, %v984_v56  ;;  %v276_v4 = vadd.f32 %v275_v27, %v986_v57  ;;  %v212_v40 = vld [vmem:[#allocation2 + $0x78] sm:$0xf] }
  0x99   :  { %v81_v43 = vpop.permute.xlu1 %80  ;;  %v329_v56 = vadd.f32 %v328_v48, %v988_v58  ;;  %v1053_v39 = vmul.f32 %v997_v18, %v1004_v24  ;;  %v1057_v22 = vmul.f32 %v999_v20, %v1004_v24  ;;  %v265_v58 = vld [vmem:[#allocation2 + $0xb8] sm:$0xf] }
  0x9a   :  { %v134_v50 = vpop.permute.xlu0 %133  ;;  %v163_v34 = vmul.f32 %v155_v9, %v81_v43  ;;  %v217_v0 = vmul.f32 %v209_v63, %v81_v43  ;;  %v270_v14 = vmul.f32 %v262_v13, %v81_v43  ;;  %v323_v15 = vmul.f32 %v315_v16, %v81_v43  ;;  %v158_v16 = vld [vmem:[#allocation2 + $0x38] sm:$0xf] }
  0x9b   :  { %v187_v51 = vmul.f32 %v156_v26, %v134_v50  ;;  %v240_v12 = vmul.f32 %v210_v29, %v134_v50  ;;  %v293_v60 = vmul.f32 %v263_v33, %v134_v50  ;;  %v346_v7 = vmul.f32 %v316_v36, %v134_v50 }
  0x9c   :  { %v399_v61 = vmul.f32 %v1044_v10, %v134_v50  ;;  %v376_v9 = vmul.f32 %v368_v17, %v81_v43  ;;  %v382_v63 = vadd.f32 %v381_v54, %v990_v59  ;;  %v170_v13 = vadd.f32 %v169_v42, %v163_v34  ;;  %v1061_v17 = vld [vmem:[#allocation2 + $0xf8] sm:$0xf] }
  0x9d   :  { %v194_v38 = vadd.f32 %v193_v28, %v187_v51  ;;  %v247_v19 = vadd.f32 %v246_v52, %v240_v12  ;;  %v300_v55 = vadd.f32 %v299_v8, %v293_v60  ;;  %v353_v62 = vadd.f32 %v352_v49, %v346_v7  ;;  %v1067_v59 = vld [vmem:[#allocation2 + $0x138] sm:$0xf] }
  0x9e   :  { %v406_v3 = vadd.f32 %v405_v53, %v399_v61  ;;  %v224_v41 = vadd.f32 %v223_v11, %v217_v0  ;;  %v277_v1 = vadd.f32 %v276_v4, %v270_v14  ;;  %v330_v57 = vadd.f32 %v329_v56, %v323_v15 }
  0x9f   :  { %v195_v23 = vadd.f32 %v194_v38, %v1002_v21  ;;  %v248_v18 = vadd.f32 %v247_v19, %v1007_v30  ;;  %v301_v2 = vadd.f32 %v300_v55, %v1010_v32  ;;  %v354_v20 = vadd.f32 %v353_v62, %v1014_v31 }
  0xa0   :  { %v407_v24 = vadd.f32 %v406_v3, %v1018_v35  ;;  %v383_v25 = vadd.f32 %v382_v63, %v376_v9 }
  0xa1   :  { %v86_v45 = vpop.permute.xlu1 %85 }
  0xa2   :  { %v144_v21 = vpop.permute.xlu0 %143  ;;  %v164_v46 = vmul.f32 %v156_v26, %v86_v45  ;;  %v218_v44 = vmul.f32 %v210_v29, %v86_v45  ;;  %v271_v27 = vmul.f32 %v263_v33, %v86_v45  ;;  %v324_v31 = vmul.f32 %v316_v36, %v86_v45 }
  0xa3   :  { %v189_v47 = vmul.f32 %v158_v16, %v144_v21  ;;  %v242_v28 = vmul.f32 %v212_v40, %v144_v21  ;;  %v295_v52 = vmul.f32 %v265_v58, %v144_v21  ;;  %v348_v48 = vmul.f32 %v1061_v17, %v144_v21 }
  0xa4   :  { %v401_v30 = vmul.f32 %v1067_v59, %v144_v21  ;;  %v171_v32 = vadd.f32 %v170_v13, %v164_v46  ;;  %v225_v54 = vadd.f32 %v224_v41, %v218_v44  ;;  %v278_v11 = vadd.f32 %v277_v1, %v271_v27 }
  0xa5   :  { %v196_v35 = vsel %vm173_vm0, %v189_v47, 0.0  ;;  %v249_v8 = vsel %vm173_vm0, %v242_v28, 0.0  ;;  %v302_v42 = vsel %vm173_vm0, %v295_v52, 0.0  ;;  %v355_v26 = vsel %vm173_vm0, %v348_v48, 0.0 }
  0xa6   :  { %v197_v29 = vadd.f32 %v196_v35, %v195_v23  ;;  %v250_v33 = vadd.f32 %v249_v8, %v248_v18  ;;  %v303_v43 = vadd.f32 %v302_v42, %v301_v2  ;;  %v356_v49 = vadd.f32 %v355_v26, %v354_v20 }
  0xa7   :  { %v408_v53 = vsel %vm173_vm0, %v401_v30, 0.0  ;;  %v226_v50 = vadd.f32 %v225_v54, %v1024_v5  ;;  %v377_v34 = vmul.f32 %v1044_v10, %v86_v45  ;;  %v331_v61 = vadd.f32 %v330_v57, %v324_v31 }
  0xa8   :  { %v198_v36 = vrot.slane %v197_v29, 4  ;;  %v251_v51 = vrot.slane %v250_v33, 4  ;;  %v304_v12 = vrot.slane %v303_v43, 4  ;;  %v357_v60 = vrot.slane %v356_v49, 4 }
  0xa9   :  { %v409_v7 = vadd.f32 %v408_v53, %v407_v24  ;;  %v384_v0 = vadd.f32 %v383_v25, %v377_v34  ;;  %v172_v14 = vadd.f32 %v171_v32, %v1021_v37  ;;  %v279_v10 = vadd.f32 %v278_v11, %v1027_v6 }
  0xaa   :  { %v199_v15 = vadd.f32 %v198_v36, %v197_v29  ;;  %v252_v38 = vadd.f32 %v251_v51, %v250_v33  ;;  %v305_v19 = vadd.f32 %v304_v12, %v303_v43  ;;  %v358_v55 = vadd.f32 %v357_v60, %v356_v49  ;;  %v96_v62 = vpop.permute.xlu0 %95  ;;  %v453_v51 = vpop.permute.xlu2 %452 }
  0xab   :  { %v410_v3 = vrot.slane %v409_v7, 4  ;;  %v166_v5 = vmul.f32 %v158_v16, %v96_v62  ;;  %v220_v4 = vmul.f32 %v212_v40, %v96_v62  ;;  %v385_v41 = vadd.f32 %v384_v0, %v1057_v22 }
  0xac   :  { %v200_v56 = vrot.slane %v199_v15, 2  ;;  %v253_v9 = vrot.slane %v252_v38, 2  ;;  %v306_v63 = vrot.slane %v305_v19, 2  ;;  %v359_v13 = vrot.slane %v358_v55, 2 }
  0xad   :  { %v411_v23 = vadd.f32 %v410_v3, %v409_v7  ;;  %v227_v37 = vsel %vm173_vm0, %v220_v4, 0.0  ;;  %v273_v1 = vmul.f32 %v265_v58, %v96_v62  ;;  %v174_v20 = vsel %vm173_vm0, %v166_v5, 0.0 }
  0xae   :  { %v201_v57 = vadd.f32 %v200_v56, %v199_v15  ;;  %v254_v18 = vadd.f32 %v253_v9, %v252_v38  ;;  %v307_v2 = vadd.f32 %v306_v63, %v305_v19  ;;  %v360_v16 = vadd.f32 %v359_v13, %v358_v55 }
  0xaf   :  { %v412_v40 = vrot.slane %v411_v23, 2  ;;  %v228_v24 = vadd.f32 %v227_v37, %v226_v50  ;;  %v326_v6 = vmul.f32 %v1061_v17, %v96_v62  ;;  %v379_v46 = vmul.f32 %v1067_v59, %v96_v62 }
  0xb0   :  { %v202_v45 = vrot.slane %v201_v57, 1  ;;  %v255_v25 = vrot.slane %v254_v18, 1  ;;  %v308_v21 = vrot.slane %v307_v2, 1  ;;  %v280_v22 = vsel %vm173_vm0, %v273_v1, 0.0 }
  0xb1   :  { %v229_v44 = vrot.slane %v228_v24, 4  ;;  %v333_v58 = vsel %vm173_vm0, %v326_v6, 0.0  ;;  %v175_v27 = vadd.f32 %v174_v20, %v172_v14  ;;  %v386_v48 = vsel %vm173_vm0, %v379_v46, 0.0 }
  0xb2   :  { %v203_v47 = vadd.f32 %v202_v45, %v201_v57  ;;  %v256_v28 = vadd.f32 %v255_v25, %v254_v18  ;;  %v309_v52 = vadd.f32 %v308_v21, %v307_v2  ;;  %v387_v32 = vadd.f32 %v386_v48, %v385_v41  ;;  %v531_v18 = vpop.permute.xlu2 %530  ;;  %v479_v21 = vpop.permute.xlu0 %478 }
  0xb3   :  { %v230_v30 = vadd.f32 %v229_v44, %v228_v24  ;;  %v176_v54 = vrot.slane %v175_v27, 4  ;;  %v361_v17 = vrot.slane %v360_v16, 1  ;;  %v413_v31 = vadd.f32 %v412_v40, %v411_v23  ;;  %v427_v23 = vpop.permute.xlu1 %426 }
  0xb4   :  { %v417_v35 = vsel %vm416_vm1, %v203_v47, %v256_v28  ;;  %v281_v8 = vadd.f32 %v280_v22, %v279_v10  ;;  %v332_v59 = vadd.f32 %v331_v61, %v1053_v39  ;;  %v388_v26 = vrot.slane %v387_v32, 4 }
  0xb5   :  { %v231_v42 = vrot.slane %v230_v30, 2  ;;  %v177_v29 = vadd.f32 %v176_v54, %v175_v27  ;;  %v414_v33 = vrot.slane %v413_v31, 1  ;;  %v419_v43 = vsel %vm418_vm2, %v417_v35, %v309_v52 }
  0xb6   :  { %v282_v49 = vrot.slane %v281_v8, 4  ;;  %v334_v53 = vadd.f32 %v333_v58, %v332_v59  ;;  %v389_v11 = vadd.f32 %v388_v26, %v387_v32  ;;  %v362_v36 = vadd.f32 %v361_v17, %v360_v16 }
  0xb7   :  { %v232_v50 = vadd.f32 %v231_v42, %v230_v30  ;;  %v178_v34 = vrot.slane %v177_v29, 2  ;;  %v415_v61 = vadd.f32 %v414_v33, %v413_v31  ;;  %v554_v35 = vstv %s1092_s1 }
  0xb8   :  { %v283_v12 = vadd.f32 %v282_v49, %v281_v8  ;;  %v335_v60 = vrot.slane %v334_v53, 4  ;;  %v390_v0 = vrot.slane %v389_v11, 2  ;;  %v421_v39 = vsel %vm420_vm3, %v419_v43, %v362_v36 }
  0xb9   :  { %v233_v7 = vrot.slane %v232_v50, 1  ;;  %v179_v14 = vadd.f32 %v178_v34, %v177_v29  ;;  %v422_v62 = vsel %vm173_vm0, %v421_v39, %v415_v61  ;;  %v557_v42 = vstv %s1094_s3  ;;  %s692_s3 = sshll.u32 %s1303_s5, 4  ;;  %s693_s3 = int_to_ptr.hbm [resolvable:$true] %s692_s3 }
  0xba   :  { %v391_v15 = vadd.f32 %v390_v0, %v389_v11  ;;  %v284_v55 = vrot.slane %v283_v12, 2  ;;  %v336_v3 = vadd.f32 %v335_v60, %v334_v53  ;;  %v573_v26 = vstv %s1096_s18 }
  0xbb   :  { %v180_v38 = vrot.slane %v179_v14, 1  ;;  %v234_v19 = vadd.f32 %v233_v7, %v232_v50  ;;  %v505_v52 = vpop.permute.xlu1 %504  ;;  %v576_v29 = vstv %s1098_s19  ;;  %v592_v33 = vstv %s1100_s20 }
  0xbc   :  { %v392_v5 = vrot.slane %v391_v15, 1  ;;  %v285_v13 = vadd.f32 %v284_v55, %v283_v12  ;;  %v337_v41 = vrot.slane %v336_v3, 2  ;;  %v595_v43 = vstv %s1102_s21 }
  0xbd   :  { %v181_v4 = vadd.f32 %v180_v38, %v179_v14  ;;  %v449_v10 = vmul.f32 %v422_v62, %v234_v19  ;;  %v611_v11 = vstv %s1104_s22  ;;  %v614_v34 = vstv %s1106_s23 }
  0xbe   :  { %v393_v56 = vadd.f32 %v392_v5, %v391_v15  ;;  %v286_v16 = vrot.slane %v285_v13, 1  ;;  %v338_v40 = vadd.f32 %v337_v41, %v336_v3  ;;  %v630_v36 = vstv %s1110_s24 }
  0xbf   :  { %v423_v9 = vmul.f32 %v422_v62, %v181_v4  ;;  %v455_v63 = vadd.f32 %v453_v51, %v449_v10  ;;  %v633_v12 = vstv %s1112_s25  ;;  %v561_v7 = vstv %s1115_s28 }
  0xc0   :  { %v527_v1 = vmul.f32 %v422_v62, %v393_v56  ;;  %v287_v6 = vadd.f32 %v286_v16, %v285_v13  ;;  %v339_v45 = vrot.slane %v338_v40, 1  ;;  %v580_v14 = vstv %s1119_s0 }
  0xc1   :  { %v707_v37 = vmul.f32 -1.442695, %v455_v63  ;;  %v429_v57 = vadd.f32 %v427_v23, %v423_v9  ;;  %v599_v39 = vstv %s1123_s29  ;;  %v618_v61 = vstv %s1126_s30 }
  0xc2   :  { %v533_v2 = vadd.f32 %v531_v18, %v527_v1  ;;  %v475_v25 = vmul.f32 %v422_v62, %v287_v6  ;;  %v340_v46 = vadd.f32 %v339_v45, %v338_v40  ;;  %v637_v19 = vstv %s1129_s4 }
  0xc3   :  { %744 = vpow2.f32 %v707_v37  ;;  %v706_v20 = vmul.f32 -1.442695, %v429_v57  ;;  %v565_v23 = vstv %s1138_s6 }
  0xc4   :  { %v710_v24 = vmul.f32 -1.442695, %v533_v2  ;;  %v481_v22 = vadd.f32 %v479_v21, %v475_v25  ;;  %v501_v27 = vmul.f32 %v422_v62, %v340_v46  ;;  %v603_v25 = vstv %s1160_s8 }
  0xc5   :  { %746 = vpow2.f32 %v706_v20  ;;  %v584_v20 = vstv %s1148_s7 }
  0xc6   :  { %748 = vpow2.f32 %v710_v24  ;;  %v708_v28 = vmul.f32 -1.442695, %v481_v22  ;;  %v507_v32 = vadd.f32 %v505_v52, %v501_v27  ;;  %v569_v22 = vstv %s1166_s9 }
  0xc8   :  { %v709_v17 = vmul.f32 -1.442695, %v507_v32 }
  0xc9   :  { %v745_v44 = vpop.eup %744 }
  0xca   :  { %v1108_v58 = vadd.f32 1.0, %v745_v44 }
  0xcb   :  { %v747_v47 = vpop.eup %746 }
  0xcc   :  { %750 = vrcp.f32 %v1108_v58  ;;  %v749_v48 = vpop.eup %748  ;;  %v1117_v30 = vadd.f32 1.0, %v747_v47  ;;  %vm465_vm5 = vweird.f32 %v1108_v58  ;;  %v469_v3 = vand.u32 2147483647, %v1108_v58 }
  0xcd   :  { %752 = vpow2.f32 %v708_v28  ;;  %v1121_v54 = vadd.f32 1.0, %v749_v48  ;;  %v471_v5 = vand.u32 2147483648, %v1108_v58 }
  0xce   :  { %754 = vrcp.f32 %v1117_v30  ;;  %v445_v10 = vand.u32 2147483648, %v1117_v30  ;;  %vm439_vm8 = vweird.f32 %v1117_v30  ;;  %v443_v13 = vand.u32 2147483647, %v1117_v30 }
  0xcf   :  { %756 = vrcp.f32 %v1121_v54  ;;  %v549_v63 = vand.u32 2147483648, %v1121_v54  ;;  %vm470_vm9 = vcmp.eq.f32.partialorder %v469_v3, 8.507059e+37  ;;  %v472_v18 = vor.u32 1.1754944e-38, %v471_v5 }
  0xd0   :  { %758 = vpow2.f32 %v709_v17  ;;  %v547_v2 = vand.u32 2147483647, %v1121_v54  ;;  %v446_v40 = vor.u32 1.1754944e-38, %v445_v10  ;;  %vm543_vm11 = vweird.f32 %v1121_v54 }
  0xd1   :  { %vm444_vm12 = vcmp.eq.f32.partialorder %v443_v13, 8.507059e+37  ;;  %v550_v46 = vor.u32 1.1754944e-38, %v549_v63  ;;  %v588_v5 = vstv %s1199_s10 }
  0xd2   :  { %v1131_v31 = vpop.eup %750  ;;  %vm1209_vm1 = vcmp.eq.f32.partialorder %v547_v2, 8.507059e+37 }
  0xd3   :  { %v753_v8 = vpop.eup %752  ;;  %v461_v59 = vmul.f32 %v1131_v31, %v1108_v58  ;;  %vm466_vm4 = vweird.f32 %v1131_v31 }
  0xd4   :  { %v1143_v49 = vadd.f32 1.0, %v753_v8  ;;  %v755_v53 = vpop.eup %754  ;;  %vm1175_vm7 = vmor %vm465_vm5, %vm466_vm4 }
  0xd5   :  { %v462_v50 = vsub.f32 1.0, %v461_v59  ;;  %v1150_v51 = vpop.eup %756  ;;  %v435_v60 = vmul.f32 %v755_v53, %v1117_v30  ;;  %vm440_vm6 = vweird.f32 %v755_v53 }
  0xd6   :  { %760 = vrcp.f32 %v1143_v49  ;;  %v539_v15 = vmul.f32 %v1150_v51, %v1121_v54  ;;  %v759_v55 = vpop.eup %758  ;;  %vm441_vm10 = vmor %vm439_vm8, %vm440_vm6  ;;  %v495_v6 = vand.u32 2147483647, %v1143_v49  ;;  %vm544_vm13 = vweird.f32 %v1150_v51 }
  0xd7   :  { %v463_v0 = vmul.f32 %v1131_v31, %v462_v50  ;;  %v436_v38 = vsub.f32 1.0, %v435_v60  ;;  %v1173_v56 = vadd.f32 1.0, %v759_v55  ;;  %vm491_vm14 = vweird.f32 %v1143_v49  ;;  %vm1244_vm3 = vmor %vm543_vm11, %vm544_vm13 }
  0xd8   :  { %v540_v1 = vsub.f32 1.0, %v539_v15  ;;  %v497_v27 = vand.u32 2147483648, %v1143_v49  ;;  %vm1205_vm0 = vcmp.eq.f32.partialorder %v495_v6, 8.507059e+37  ;;  %v641_v6 = vstv %s1248_s2 }
  0xd9   :  { %v464_v62 = vadd.f32 %v1131_v31, %v463_v0  ;;  %v437_v4 = vmul.f32 %v755_v53, %v436_v38  ;;  %762 = vrcp.f32 %v1173_v56  ;;  %vm517_vm5 = vweird.f32 %v1173_v56 }
  0xda   :  { %v541_v21 = vmul.f32 %v1150_v51, %v540_v1 }
  0xdb   :  { %v468_v37 = vsel %vm1175_vm7, %v1131_v31, %v464_v62  ;;  %v438_v57 = vadd.f32 %v755_v53, %v437_v4 }
  0xdc   :  { %v761_v41 = vpop.eup %760  ;;  %v473_v45 = vsel %vm470_vm9, %v472_v18, %v468_v37  ;;  %v542_v59 = vadd.f32 %v1150_v51, %v541_v21  ;;  %v607_v18 = vstv %s1230_s12 }
  0xdd   :  { %v442_v16 = vsel %vm441_vm10, %v755_v53, %v438_v57  ;;  %v487_v24 = vmul.f32 %v761_v41, %v1143_v49  ;;  %v558_v28 = vmul.f32 %v557_v42, %v473_v45  ;;  %v577_v52 = vmul.f32 %v576_v29, %v473_v45 }
  0xde   :  { %v447_v44 = vsel %vm444_vm12, %v446_v40, %v442_v16  ;;  %vm492_vm15 = vweird.f32 %v761_v41  ;;  %v596_v42 = vmul.f32 %v595_v43, %v473_v45  ;;  %v615_v29 = vmul.f32 %v614_v34, %v473_v45 }
  0xdf   :  { %v488_v58 = vsub.f32 1.0, %v487_v24  ;;  %v763_v47 = vpop.eup %762  ;;  %v555_v32 = vmul.f32 %v554_v35, %v447_v44  ;;  %v574_v17 = vmul.f32 %v573_v26, %v447_v44  ;;  %v593_v53 = vmul.f32 %v592_v33, %v447_v44  ;;  %vm493_vm2 = vmor %vm491_vm14, %vm492_vm15 }
  0xe0   :  { %v513_v8 = vmul.f32 %v763_v47, %v1173_v56  ;;  %v612_v50 = vmul.f32 %v611_v11, %v447_v44  ;;  %v521_v35 = vand.u32 2147483647, %v1173_v56  ;;  %v634_v26 = vmul.f32 %v633_v12, %v473_v45 }
  0xe1   :  { %v489_v31 = vmul.f32 %v761_v41, %v488_v58  ;;  %v631_v15 = vmul.f32 %v630_v36, %v447_v44  ;;  %v498_v33 = vor.u32 1.1754944e-38, %v497_v27  ;;  %v523_v43 = vand.u32 2147483648, %v1173_v56 }
  0xe2   :  { %v514_v0 = vsub.f32 1.0, %v513_v8  ;;  %v559_v34 = vadd.f32 %v558_v28, %v555_v32  ;;  %v578_v36 = vadd.f32 %v577_v52, %v574_v17  ;;  %v597_v38 = vadd.f32 %v596_v42, %v593_v53 }
  0xe3   :  { %v490_v60 = vadd.f32 %v761_v41, %v489_v31  ;;  %vm518_vm4 = vweird.f32 %v763_v47  ;;  %v546_v54 = vsel %vm1244_vm3, %v1150_v51, %v542_v59  ;;  %v616_v62 = vadd.f32 %v615_v29, %v612_v50 }
  0xe4   :  { %v515_v49 = vmul.f32 %v763_v47, %v514_v0  ;;  %vm1256_vm6 = vcmp.eq.f32.partialorder %v521_v35, 8.507059e+37  ;;  %v635_v56 = vadd.f32 %v634_v26, %v631_v15  ;;  %vm519_vm7 = vmor %vm517_vm5, %vm518_vm4  ;;  %v524_v13 = vor.u32 1.1754944e-38, %v523_v43 }
  0xe5   :  { %v494_v12 = vsel %vm493_vm2, %v761_v41, %v490_v60  ;;  %v551_v41 = vsel %vm1209_vm1, %v550_v46, %v546_v54  ;;  %v622_v57 = vstv %s1225_s11  ;;  %v626_v28 = vstv %s1261_s13 }
  0xe6   :  { %v499_v55 = vsel %vm1205_vm0, %v498_v33, %v494_v12  ;;  %v516_v51 = vadd.f32 %v763_v47, %v515_v49  ;;  %v570_v45 = vmul.f32 %v569_v22, %v551_v41  ;;  %v589_v21 = vmul.f32 %v588_v5, %v551_v41 }
  0xe7   :  { %v562_v4 = vmul.f32 %v561_v7, %v499_v55  ;;  %v581_v10 = vmul.f32 %v580_v14, %v499_v55  ;;  %v600_v9 = vmul.f32 %v599_v39, %v499_v55  ;;  %v619_v63 = vmul.f32 %v618_v61, %v499_v55 }
  0xe8   :  { %v520_v7 = vsel %vm519_vm7, %v763_v47, %v516_v51  ;;  %v638_v1 = vmul.f32 %v637_v19, %v499_v55  ;;  %v608_v47 = vmul.f32 %v607_v18, %v551_v41 }
  0xe9   :  { %v563_v14 = vadd.f32 %v562_v4, %v559_v34  ;;  %v582_v37 = vadd.f32 %v581_v10, %v578_v36  ;;  %v601_v39 = vadd.f32 %v600_v9, %v597_v38  ;;  %v525_v61 = vsel %vm1256_vm6, %v524_v13, %v520_v7 }
  0xea   :  { %v566_v2 = vmul.f32 %v565_v23, %v525_v61  ;;  %v585_v16 = vmul.f32 %v584_v20, %v525_v61  ;;  %v604_v40 = vmul.f32 %v603_v25, %v525_v61  ;;  %v620_v24 = vadd.f32 %v619_v63, %v616_v62 }
  0xeb   :  { %v639_v46 = vadd.f32 %v638_v1, %v635_v56  ;;  %v623_v19 = vmul.f32 %v622_v57, %v525_v61  ;;  %v642_v52 = vmul.f32 %v641_v6, %v525_v61  ;;  %v645_v20 = vstv %s1273_s14 }
  0xec   :  { %v567_v44 = vadd.f32 %v566_v2, %v563_v14  ;;  %v586_v58 = vadd.f32 %v585_v16, %v582_v37  ;;  %v605_v27 = vadd.f32 %v604_v40, %v601_v39  ;;  %v627_v25 = vmul.f32 %v626_v28, %v551_v41 }
  0xed   :  { %v624_v30 = vadd.f32 %v623_v19, %v620_v24  ;;  %v643_v17 = vadd.f32 %v642_v52, %v639_v46  ;;  %v646_v59 = vmul.f32 %v645_v20, %v551_v41 }
  0xee   :  { %v571_v48 = vadd.f32 %v570_v45, %v567_v44  ;;  %v590_v23 = vadd.f32 %v589_v21, %v586_v58  ;;  %v609_v32 = vadd.f32 %v608_v47, %v605_v27 }
  0xef   :  { %v628_v8 = vadd.f32 %v627_v25, %v624_v30  ;;  %v647_v42 = vadd.f32 %v646_v59, %v643_v17 }
  0xf0   :  { %v648_v31 = vmax.f32 %v571_v48, %v590_v23 }
  0xf2   :  { %v649_v22 = vmax.f32 %v648_v31, %v609_v32 }
  0xf4   :  { %v650_v29 = vmax.f32 %v649_v22, %v628_v8 }
  0xf6   :  { %v651_v53 = vmax.f32 %v650_v29, %v647_v42 }
  0xf8   :  { %v652_v50 = vsub.f32 %v571_v48, %v651_v53  ;;  %v655_v60 = vsub.f32 %v590_v23, %v651_v53  ;;  %v658_v0 = vsub.f32 %v609_v32, %v651_v53  ;;  %v661_v35 = vsub.f32 %v628_v8, %v651_v53 }
  0xf9   :  { %v664_v43 = vsub.f32 %v647_v42, %v651_v53 }
  0xfa   :  { %v653_v26 = vmul.f32 1.442695, %v652_v50  ;;  %v656_v15 = vmul.f32 1.442695, %v655_v60  ;;  %v659_v33 = vmul.f32 1.442695, %v658_v0 }
  0xfb   :  { %v662_v11 = vmul.f32 1.442695, %v661_v35  ;;  %v665_v34 = vmul.f32 1.442695, %v664_v43 }
  0xfc   :  { %764 = vpow2.f32 %v653_v26 }
  0xfd   :  { %766 = vpow2.f32 %v656_v15 }
  0xfe   :  { %768 = vpow2.f32 %v659_v33 }
  0xff   :  { %770 = vpow2.f32 %v662_v11 }
 0x100   :  { %772 = vpow2.f32 %v665_v34 }
 0x102   :  { %v765_v36 = vpop.eup %764 }
 0x103   :  { %v767_v12 = vpop.eup %766 }
 0x104   :  { %v667_v49 = vadd.f32 %v767_v12, %v765_v36  ;;  %v769_v38 = vpop.eup %768 }
 0x105   :  { %v771_v54 = vpop.eup %770 }
 0x106   :  { %v668_v55 = vadd.f32 %v769_v38, %v667_v49  ;;  %v773_v3 = vpop.eup %772 }
 0x108   :  { %v669_v62 = vadd.f32 %v771_v54, %v668_v55 }
 0x10a   :  { %v670_v5 = vadd.f32 %v773_v3, %v669_v62 }
 0x10c   :  { %774 = vrcp.f32 %v670_v5 }
 0x112   :  { %v775_v4 = vpop.eup %774 }
 0x113   :  { %v672_v10 = vmul.f32 %v775_v4, %v765_v36  ;;  %v674_v9 = vmul.f32 %v775_v4, %v767_v12  ;;  %v677_v51 = vmul.f32 %v775_v4, %v769_v38  ;;  %v680_v56 = vmul.f32 %v775_v4, %v771_v54 }
 0x114   :  { %v683_v63 = vmul.f32 %v775_v4, %v773_v3 }
 0x115   :  { %673 = vst [vmem:[#allocation7] sm:$0x1f] %v672_v10 }
 0x116   :  { %676 = vst [vmem:[#allocation7 + $0x8] sm:$0x1f] %v674_v9 }
 0x117   :  { %679 = vst [vmem:[#allocation7 + $0x10] sm:$0x1f] %v677_v51 }
 0x118   :  { %682 = vst [vmem:[#allocation7 + $0x18] sm:$0x1f] %v680_v56 }
 0x119   :  { %685 = vst [vmem:[#allocation7 + $0x20] sm:$0x1f] %v683_v63 }
 0x11a   :  { %698 = dma.vmem_to_hbm [thread:$0]  %s691_s16, 640, %s693_s3, [#allocation4], %s843_s26, %s843_s26, %s844_s27  }
 0x11b   :  { %840 = dma.done.wait [#allocation4], 640  }
 0x11c   :  { %841 = vsyncadd [#allocation4], 4294966656 }
 0x11d   :  { %703 = vsyncpa [#allocation3], 1 }
 0x11e   :  { %704 = vsyncpa [#allocation4], 1 }
 0x11f   :  { %705 = vsyncpa [#allocation5], 1 }

</bundles_post_ra>
